<compile_context>
chip_gen: v6e
topology: v6e:2x2x1
jax: 0.10.0
libtpu: 0.0.40
codegen_flags: <defaults>
</compile_context>

<pallas_src>
import functools

import jax
import jax.numpy as jnp
from jax.experimental import pallas as pl
from jax.experimental.pallas import tpu as pltpu

HIDDEN = 1024  # bottleneck of ad_layer1 (fixed in the module)


def adv_net_kernel(x_ref, w1_ref, b1_ref, w3_ref, b3_ref, o_ref, acc_ref, *, inv_hw):
    """Grid: (batch_tiles, hw_tiles).  hw axis is a reduction (arbitrary)."""
    hw_step = pl.program_id(1)

    @pl.when(hw_step == 0)
    def _init():
        acc_ref[...] = jnp.zeros_like(acc_ref)

    # Running spatial sum in f32 (upcast also covers bf16 inputs on v5e).
    acc_ref[...] += jnp.sum(x_ref[...].astype(jnp.float32), axis=-1)

    @pl.when(hw_step == pl.num_programs(1) - 1)
    def _finalize():
        # AdaptiveAvgPool2d((1,1)) + Flatten: mean over spatial axis.
        pooled = acc_ref[...] * inv_hw                                  # (bt, C)

        # ad_layer1: Linear(C -> 1024) + ReLU  (MXU matmul, f32 accumulate).
        w1 = w1_ref[...].astype(jnp.float32)
        h = jnp.dot(pooled, w1, preferred_element_type=jnp.float32)
        h = jnp.maximum(h + b1_ref[...].astype(jnp.float32), 0.0)       # (bt, 1024)

        # dropout1: eval-mode identity.
        # TODO(synk): train-mode stochastic dropout (p=0.5) not implemented.

        # ad_layer3: Linear(1024 -> 1) + Sigmoid.  w3 is a lane-dense (1, 1024)
        # row -> VPU multiply + lane reduce instead of a lane-width-1 MXU matmul.
        w3 = w3_ref[...].astype(jnp.float32)
        logits = jnp.sum(h * w3, axis=-1, keepdims=True) + b3_ref[0, 0]
        o_ref[...] = jax.nn.sigmoid(logits).astype(o_ref.dtype)


def _round_up(x, m):
    return (x + m - 1) // m * m


def _pick_hw_tile(hw):
    """Multiple of 128 that divides HW (capped at 512), else full HW."""
    if hw % 128 != 0:
        return hw
    t = 128
    while t * 2 <= 512 and hw % (t * 2) == 0:
        t *= 2
    return t


def _pick_b_tile(b_pad, c, hw_tile, budget_bytes=8 * 1024 * 1024):
    """Largest multiple-of-8 divisor of b_pad (<=128) whose x block fits budget."""
    best = 8
    t = 8
    while t <= min(b_pad, 128):
        if b_pad % t == 0 and t * c * hw_tile * 4 <= budget_bytes:
            best = t
        t += 8
    return best


def adversarial_network_forward(x_nchw, w1_t, b1, w3_row, b3, *, block_b=None):
    """x_nchw: (B, C, H, W).  w1_t: (C, 1024), b1: (1, 1024), w3_row: (1, 1024),
    b3: (1, 1).  Returns (B, 1) float32."""
    B, C, H, W = x_nchw.shape
    HW = H * W
    x = x_nchw.reshape(B, C, HW)  # free reshape; spatial axis last (lane axis)

    hw_tile = _pick_hw_tile(HW)
    if block_b is not None:
        assert block_b % 8 == 0
        bt = block_b
        b_pad = _round_up(B, bt)
    else:
        b_pad = _round_up(B, 8)
        bt = _pick_b_tile(b_pad, C, hw_tile)
    if b_pad != B:
        x = jnp.pad(x, ((0, b_pad - B), (0, 0), (0, 0)))

    grid = (b_pad // bt, HW // hw_tile)
    kernel = functools.partial(adv_net_kernel, inv_hw=1.0 / HW)

    out = pl.pallas_call(
        kernel,
        out_shape=jax.ShapeDtypeStruct((b_pad, 1), jnp.float32),
        grid=grid,
        in_specs=[
            pl.BlockSpec((bt, C, hw_tile), lambda i, j: (i, 0, j)),   # x tiles
            pl.BlockSpec((C, HIDDEN), lambda i, j: (0, 0)),           # w1 (resident)
            pl.BlockSpec((1, HIDDEN), lambda i, j: (0, 0)),           # b1 row
            pl.BlockSpec((1, HIDDEN), lambda i, j: (0, 0)),           # w3 row (lane-dense)
            pl.BlockSpec(memory_space=pltpu.MemorySpace.SMEM),        # b3 scalar
        ],
        out_specs=pl.BlockSpec((bt, 1), lambda i, j: (i, 0)),
        scratch_shapes=[pltpu.VMEM((bt, C), jnp.float32)],            # spatial-sum acc
        compiler_params=pltpu.CompilerParams(
            dimension_semantics=("parallel", "arbitrary"),
            vmem_limit_bytes=64 * 1024 * 1024,
        ),
    )(x, w1_t, b1, w3_row, b3)
    return out[:B]


def init_params(key, in_features, dtype=jnp.float32):
    """Deterministic init mirroring the module's __init__."""
    k1, k3 = jax.random.split(key)
    # ad_layer1.weight ~ N(0, 0.01), shape (1024, in_features); stored transposed.
    w1 = 0.01 * jax.random.normal(k1, (HIDDEN, in_features), dtype=jnp.float32)
    b1 = jnp.zeros((1, HIDDEN), dtype=jnp.float32)
    # ad_layer3.weight ~ N(0, 0.3), shape (1, 1024); kept lane-dense as a row.
    w3_row = 0.3 * jax.random.normal(k3, (1, HIDDEN), dtype=jnp.float32)
    b3 = jnp.zeros((1, 1), dtype=jnp.float32)
    return w1.T.astype(dtype), b1, w3_row.astype(dtype), b3


def reference_forward(x_nchw, w1_t, b1, w3_row, b3):
    pooled = jnp.mean(x_nchw.astype(jnp.float32), axis=(2, 3))
    h = jnp.maximum(pooled @ w1_t.astype(jnp.float32) + b1, 0.0)
    logits = jnp.sum(h * w3_row.astype(jnp.float32), axis=-1, keepdims=True) + b3
    return jax.nn.sigmoid(logits)


if __name__ == "__main__":
    key = jax.random.PRNGKey(0)

    # cfg 1: the small spec shape (single grid step per axis)
    # cfg 2: multi-step grid in both batch (B=9 -> pad 16, block 8 -> 2 steps) and
    #        HW (1024 -> 2 x 512) to exercise the accumulator / pipelining path
    # cfg 3: bf16 activations + weights (halved HBM traffic), f32 accumulation
    configs = [
        dict(B=2, C=4, H=16, W=16, dtype=jnp.float32, block_b=None, atol=1e-5),
        dict(B=9, C=8, H=32, W=32, dtype=jnp.float32, block_b=8, atol=1e-5),
        dict(B=4, C=4, H=16, W=16, dtype=jnp.bfloat16, block_b=None, atol=5e-3),
    ]
    for cfg in configs:
        key, kx, kp = jax.random.split(key, 3)
        B, C, H, W = cfg["B"], cfg["C"], cfg["H"], cfg["W"]
        x = jax.random.normal(kx, (B, C, H, W), dtype=jnp.float32)
        w1_t, b1, w3_row, b3 = init_params(kp, C)
        if cfg["dtype"] == jnp.bfloat16:
            x = x.astype(jnp.bfloat16)
            w1_t = w1_t.astype(jnp.bfloat16)
            w3_row = w3_row.astype(jnp.bfloat16)

        out = adversarial_network_forward(x, w1_t, b1, w3_row, b3,
                                          block_b=cfg["block_b"])
        out = jax.block_until_ready(out)

        ref = reference_forward(x, w1_t, b1, w3_row, b3)
        assert out.shape == (B, 1)
        assert jnp.allclose(out, ref, atol=cfg["atol"], rtol=1e-3), (
            f"mismatch for {cfg}: max abs err {jnp.max(jnp.abs(out - ref))}")

    print("KERNEL_OK")
</pallas_src>

<mosaic_0001>
module attributes {stable_mosaic.version = 11 : i64} {
  func.func @adv_net_kernel(%arg0: i32, %arg1: i32, %arg2: memref<8x4x256xf32, #tpu.memory_space<vmem>>, %arg3: memref<4x1024xf32, #tpu.memory_space<vmem>>, %arg4: memref<1x1024xf32, #tpu.memory_space<vmem>>, %arg5: memref<1x1024xf32, #tpu.memory_space<vmem>>, %arg6: memref<1x1xf32, #tpu.memory_space<smem>>, %arg7: memref<8x1xf32, #tpu.memory_space<vmem>>, %arg8: memref<8x4xf32, #tpu.memory_space<vmem>>) attributes {dimension_semantics = [#tpu.dimension_semantics<parallel>, #tpu.dimension_semantics<arbitrary>], iteration_bounds = array<i64: 1, 1>, scalar_prefetch = 0 : i64, scratch_operands = 1 : i64, tpu.core_type = #tpu.core_type<tc>, window_params = [{transform_indices = @transform_0, window_bounds = array<i64: 8, 4, 256>}, {pipeline_mode = #tpu.pipeline_mode<synchronous>, transform_indices = @transform_1, window_bounds = array<i64: 4, 1024>}, {pipeline_mode = #tpu.pipeline_mode<synchronous>, transform_indices = @transform_2, window_bounds = array<i64: 1, 1024>}, {pipeline_mode = #tpu.pipeline_mode<synchronous>, transform_indices = @transform_3, window_bounds = array<i64: 1, 1024>}, {transform_indices = @transform_4, window_bounds = array<i64: 1, 1>}, {transform_indices = @transform_5, window_bounds = array<i64: 8, 1>}]} {
    %c0_i32 = arith.constant 0 : i32
    %0 = arith.cmpi eq, %arg1, %c0_i32 : i32
    %1 = arith.extui %0 : i1 to i32
    %c0_i32_0 = arith.constant 0 : i32
    %2 = arith.cmpi ne, %1, %c0_i32_0 : i32
    scf.if %2 {
      %cst_9 = arith.constant 0.000000e+00 : f32
      %11 = vector.broadcast %cst_9 : f32 to vector<8x4xf32>
      %c0_10 = arith.constant 0 : index
      %c0_11 = arith.constant 0 : index
      %12 = vector.load %arg8[%c0_10, %c0_11] : memref<8x4xf32, #tpu.memory_space<vmem>>, vector<8x4xf32>
      tpu.vector_store %arg8[%c0_10, %c0_11], %11 {strides = array<i32>} : memref<8x4xf32, #tpu.memory_space<vmem>>, vector<8x4xf32>,
    } else {
    }
    %c0 = arith.constant 0 : index
    %c0_1 = arith.constant 0 : index
    %3 = vector.load %arg8[%c0, %c0_1] : memref<8x4xf32, #tpu.memory_space<vmem>>, vector<8x4xf32>
    %c0_2 = arith.constant 0 : index
    %c0_3 = arith.constant 0 : index
    %c0_4 = arith.constant 0 : index
    %4 = vector.load %arg2[%c0_2, %c0_3, %c0_4] : memref<8x4x256xf32, #tpu.memory_space<vmem>>, vector<8x4x256xf32>
    %cst = arith.constant dense<0.000000e+00> : vector<8x4xf32>
    %5 = vector.multi_reduction <add>, %4, %cst [2] : vector<8x4x256xf32> to vector<8x4xf32>
    %6 = arith.addf %3, %5 : vector<8x4xf32>
    %c0_5 = arith.constant 0 : index
    %c0_6 = arith.constant 0 : index
    %7 = vector.load %arg8[%c0_5, %c0_6] : memref<8x4xf32, #tpu.memory_space<vmem>>, vector<8x4xf32>
    tpu.vector_store %arg8[%c0_5, %c0_6], %6 {strides = array<i32>} : memref<8x4xf32, #tpu.memory_space<vmem>>, vector<8x4xf32>,
    %c0_i32_7 = arith.constant 0 : i32
    %8 = arith.cmpi eq, %arg1, %c0_i32_7 : i32
    %9 = arith.extui %8 : i1 to i32
    %c0_i32_8 = arith.constant 0 : i32
    %10 = arith.cmpi ne, %9, %c0_i32_8 : i32
    scf.if %10 {
      %c0_9 = arith.constant 0 : index
      %c0_10 = arith.constant 0 : index
      %11 = vector.load %arg8[%c0_9, %c0_10] : memref<8x4xf32, #tpu.memory_space<vmem>>, vector<8x4xf32>
      %cst_11 = arith.constant 3.906250e-03 : f32
      %12 = vector.broadcast %cst_11 : f32 to vector<8x4xf32>
      %13 = arith.mulf %11, %12 : vector<8x4xf32>
      %c0_12 = arith.constant 0 : index
      %c0_13 = arith.constant 0 : index
      %14 = vector.load %arg3[%c0_12, %c0_13] : memref<4x1024xf32, #tpu.memory_space<vmem>>, vector<4x1024xf32>
      %cst_14 = arith.constant dense<0.000000e+00> : vector<8x1024xf32>
      %15 = tpu.matmul %13, %14, %cst_14 {dimension_numbers = #tpu.dot_dimension_numbers<[1], [0], [0], [1], [0, 0, 1, 1], [], []>} : vector<8x4xf32>, vector<4x1024xf32>, vector<8x1024xf32> -> vector<8x1024xf32>
      %c0_15 = arith.constant 0 : index
      %c0_16 = arith.constant 0 : index
      %16 = vector.load %arg4[%c0_15, %c0_16] : memref<1x1024xf32, #tpu.memory_space<vmem>>, vector<1x1024xf32>
      %17 = vector.broadcast %16 : vector<1x1024xf32> to vector<8x1024xf32>
      %18 = arith.addf %15, %17 : vector<8x1024xf32>
      %cst_17 = arith.constant 0.000000e+00 : f32
      %19 = vector.broadcast %cst_17 : f32 to vector<8x1024xf32>
      %20 = arith.maximumf %18, %19 : vector<8x1024xf32>
      %c0_18 = arith.constant 0 : index
      %c0_19 = arith.constant 0 : index
      %21 = vector.load %arg5[%c0_18, %c0_19] : memref<1x1024xf32, #tpu.memory_space<vmem>>, vector<1x1024xf32>
      %22 = vector.broadcast %21 : vector<1x1024xf32> to vector<8x1024xf32>
      %23 = arith.mulf %20, %22 : vector<8x1024xf32>
      %cst_20 = arith.constant dense<0.000000e+00> : vector<8xf32>
      %24 = vector.multi_reduction <add>, %23, %cst_20 [1] : vector<8x1024xf32> to vector<8xf32>
      %25 = vector.shape_cast %24 : vector<8xf32> to vector<8x1xf32>
      %c0_21 = arith.constant 0 : index
      %c0_22 = arith.constant 0 : index
      %26 = memref.load %arg6[%c0_21, %c0_22] : memref<1x1xf32, #tpu.memory_space<smem>>
      %27 = vector.broadcast %26 : f32 to vector<8x1xf32>
      %28 = arith.addf %25, %27 : vector<8x1xf32>
      %29 = arith.negf %28 : vector<8x1xf32>
      %30 = math.exp %29 : vector<8x1xf32>
      %cst_23 = arith.constant 1.000000e+00 : f32
      %31 = vector.broadcast %cst_23 : f32 to vector<8x1xf32>
      %32 = arith.addf %31, %30 : vector<8x1xf32>
      %33 = arith.divf %31, %32 : vector<8x1xf32>
      %c0_24 = arith.constant 0 : index
      %c0_25 = arith.constant 0 : index
      %34 = vector.load %arg7[%c0_24, %c0_25] : memref<8x1xf32, #tpu.memory_space<vmem>>, vector<8x1xf32>
      tpu.vector_store %arg7[%c0_24, %c0_25], %33 {strides = array<i32>} : memref<8x1xf32, #tpu.memory_space<vmem>>, vector<8x1xf32>,
    } else {
    }
    return
  }
  func.func @transform_0(%arg0: i32, %arg1: i32) -> (i32, i32, i32) {
    %c0_i32 = arith.constant 0 : i32
    %c0_i32_0 = arith.constant 0 : i32
    return %arg0, %c0_i32, %arg1 : i32, i32, i32
  }
  func.func @transform_1(%arg0: i32, %arg1: i32) -> (i32, i32) {
    %c0_i32 = arith.constant 0 : i32
    %c0_i32_0 = arith.constant 0 : i32
    %c0_i32_1 = arith.constant 0 : i32
    return %c0_i32, %c0_i32_0 : i32, i32
  }
  func.func @transform_2(%arg0: i32, %arg1: i32) -> (i32, i32) {
    %c0_i32 = arith.constant 0 : i32
    %c0_i32_0 = arith.constant 0 : i32
    %c0_i32_1 = arith.constant 0 : i32
    return %c0_i32, %c0_i32_0 : i32, i32
  }
  func.func @transform_3(%arg0: i32, %arg1: i32) -> (i32, i32) {
    %c0_i32 = arith.constant 0 : i32
    %c0_i32_0 = arith.constant 0 : i32
    %c0_i32_1 = arith.constant 0 : i32
    return %c0_i32, %c0_i32_0 : i32, i32
  }
  func.func @transform_4(%arg0: i32, %arg1: i32) -> (i32, i32) {
    %c0_i32 = arith.constant 0 : i32
    %c0_i32_0 = arith.constant 0 : i32
    %c0_i32_1 = arith.constant 0 : i32
    return %c0_i32, %c0_i32_0 : i32, i32
  }
  func.func @transform_5(%arg0: i32, %arg1: i32) -> (i32, i32) {
    %c0_i32 = arith.constant 0 : i32
    %c0_i32_0 = arith.constant 0 : i32
    return %arg0, %c0_i32 : i32, i32
  }
}

</mosaic_0001>

<bundles_post_ra>
// kernel: tpu_custom_call.1
= control target key start
LH: loop header
LB: loop body
LE: loop exit
PB: predicated region body
PF: predicated region fallthrough
CT: control target
= control target key end

     0   :  { %11 = vsyncpa [#allocation5], 0  ;;  %s875_s0 = inlined_call_operand.hbm [shape: f32[8,4,256], index: 0, kind: input, shape index: {}]   ;;  %s876_s1 = inlined_call_operand.hbm [shape: f32[4,1024], index: 1, kind: input, shape index: {}]   ;;  %s877_s2 = inlined_call_operand.hbm [shape: f32[1,1024], index: 2, kind: input, shape index: {}]   ;;  %s878_s3 = inlined_call_operand.hbm [shape: f32[1,1024], index: 3, kind: input, shape index: {}]   ;;  %s879_s4 = inlined_call_operand.<no memory space> [shape: f32[1,1], index: 4, kind: input, shape index: {}]   ;;  %s880_s5 = inlined_call_operand.vmem [shape: f32[8,1], index: 5, kind: output, shape index: {}]  }
   0x1   :  { %12 = vsyncpa [#allocation7], 0 }
   0x2   :  { %13 = vsyncpa [#allocation10], 0  ;;  %s779_s18 = smov [#allocation6]   ;;  %s780_s20 = smov [#allocation4]  }
   0x3   :  { %s32_s19 = sshll.u32 %s779_s18, 4  ;;  %s19_s21 = sshll.u32 %s780_s20, 4  ;;  %s33_s19 = int_to_ptr.vmem [resolvable:$true] %s32_s19  ;;  %s20_s21 = int_to_ptr.vmem [resolvable:$true] %s19_s21 }
   0x4   :  { %s701_s22 = scalar_lea.vmem %s33_s19, 512  ;;  %p706_p1 = scmp.lt.s32.totalorder %s33_s19, %s33_s19 }
   0x5   :  { %p702_p0 = scmp.ne.s32.totalorder %s33_s19, %s701_s22  ;;  %p707_p2 = scmp.lt.s32.totalorder %s701_s22, %s701_s22 }
   0x7   :  { %p708_p3 = por %p707_p2, %p706_p1 }
   0x9   :  { %p709_p4 = pnand %p708_p3, %p702_p0 }
   0xb   :  { %712 = shalt.err (!%p709_p4)
}
   0xc   :  { %35 = dma.hbm_to_vmem [thread:$0]  %s876_s1, 512, %s33_s19, [#allocation7]  }
   0xd   :  { %s721_s25 = scalar_lea.vmem %s20_s21, 1024  ;;  %p726_p6 = scmp.lt.s32.totalorder %s20_s21, %s20_s21 }
   0xe   :  { %p722_p5 = scmp.ne.s32.totalorder %s20_s21, %s721_s25  ;;  %p727_p7 = scmp.lt.s32.totalorder %s721_s25, %s721_s25 }
  0x10   :  { %p728_p8 = por %p727_p7, %p726_p6 }
  0x12   :  { %p729_p9 = pnand %p728_p8, %p722_p5 }
  0x14   :  { %732 = shalt.err (!%p729_p9)
}
  0x15   :  { %s781_s26 = smov 128   ;;  %s782_s27 = smov 8  }
  0x16   :  { %25 = dma.hbm_to_vmem [thread:$0]  %s875_s0, 1024, %s20_s21, [#allocation5], %s781_s26, %s781_s26, %s782_s27  }
  0x17   :  { %s783_s30 = smov [#allocation8]   ;;  %s784_s7 = smov [#allocation9]  }
  0x18   :  { %s42_s6 = sshll.u32 %s783_s30, 4  ;;  %s52_s8 = sshll.u32 %s784_s7, 4  ;;  %s43_s6 = int_to_ptr.vmem [resolvable:$true] %s42_s6  ;;  %s53_s8 = int_to_ptr.vmem [resolvable:$true] %s52_s8 }
  0x19   :  { %s741_s1 = scalar_lea.vmem %s43_s6, 128  ;;  %p746_p11 = scmp.lt.s32.totalorder %s43_s6, %s43_s6 }
  0x1a   :  { %p742_p10 = scmp.ne.s32.totalorder %s43_s6, %s741_s1  ;;  %p747_p12 = scmp.lt.s32.totalorder %s741_s1, %s741_s1 }
  0x1c   :  { %p748_p13 = por %p747_p12, %p746_p11 }
  0x1e   :  { %p749_p0 = pnand %p748_p13, %p742_p10 }
  0x20   :  { %752 = shalt.err (!%p749_p0)
}
  0x21   :  { %45 = dma.hbm_to_vmem [thread:$0]  %s877_s2, 128, %s43_s6, [#allocation7]  }
  0x22   :  { %s761_s11 = scalar_lea.vmem %s53_s8, 128  ;;  %p766_p2 = scmp.lt.s32.totalorder %s53_s8, %s53_s8 }
  0x23   :  { %p762_p1 = scmp.ne.s32.totalorder %s53_s8, %s761_s11  ;;  %p767_p3 = scmp.lt.s32.totalorder %s761_s11, %s761_s11 }
  0x25   :  { %p768_p4 = por %p767_p3, %p766_p2 }
  0x27   :  { %p769_p5 = pnand %p768_p4, %p762_p1 }
  0x29   :  { %772 = shalt.err (!%p769_p5)
}
  0x2a   :  { %55 = dma.hbm_to_vmem [thread:$0]  %s878_s3, 128, %s53_s8, [#allocation10]  }
  0x2b   :  { %773 = dma.done.wait [#allocation5], 1024  }
  0x2c   :  { %774 = vsyncadd [#allocation5], 4294966272 }
  0x2d   :  { %775 = dma.done.wait [#allocation7], 640  }
  0x2e   :  { %776 = vsyncadd [#allocation7], 4294966656 }
  0x2f   :  { %777 = dma.done.wait [#allocation10], 128  }
  0x30   :  { %778 = vsyncadd [#allocation10], 4294967168  ;;  %vm109_vm0 = vcmask 1043456   ;;  %v77_v0 = vld [vmem:[#allocation4] sm:$0xff]  ;;  %v79_v1 = vld [vmem:[#allocation4 + $0x10] sm:$0xff]  ;;  %vm74_vm1 = vcmask 31744   ;;  %v158_v49 = vlaneseq }
  0x31   :  { %v78_v2 = vld [vmem:[#allocation4 + $0x8] sm:$0xff]  ;;  %v93_v3 = vcombine.high %v77_v0, %v77_v0  ;;  %v110_v4 = vsel %vm109_vm0, %v77_v0, 0.0  ;;  %v95_v5 = vcombine.high %v79_v1, %v79_v1  ;;  %v120_v6 = vsel %vm109_vm0, %v79_v1, 0.0  ;;  %v80_v7 = vld [vmem:[#allocation4 + $0x18] sm:$0xff]  ;;  %v81_v8 = vld [vmem:[#allocation4 + $0x20] sm:$0xff] }
  0x32   :  { %v94_v9 = vcombine.high %v78_v2, %v78_v2  ;;  %v115_v10 = vsel %vm109_vm0, %v78_v2, 0.0  ;;  %v96_v11 = vcombine.high %v80_v7, %v80_v7  ;;  %v82_v12 = vld [vmem:[#allocation4 + $0x28] sm:$0xff]  ;;  %v125_v15 = vsel %vm109_vm0, %v80_v7, 0.0  ;;  %v83_v21 = vld [vmem:[#allocation4 + $0x30] sm:$0xff]  ;;  %v84_v22 = vld [vmem:[#allocation4 + $0x38] sm:$0xff] }
  0x33   :  { %v111_v13 = vsel %vm109_vm0, %v93_v3, 0.0  ;;  %v121_v14 = vsel %vm109_vm0, %v95_v5, 0.0  ;;  %v97_v16 = vcombine.high %v81_v8, %v81_v8  ;;  %v98_v23 = vcombine.high %v82_v12, %v82_v12  ;;  %v215_v41 = vld [vmem:[#allocation6] sm:$0xff]  ;;  %v216_v42 = vld [vmem:[#allocation6 + $0x8] sm:$0xff]  ;;  %v217_v45 = vld [vmem:[#allocation6 + $0x10] sm:$0xff] }
  0x34   :  { %v112_v17 = vadd.f32 %v111_v13, %v110_v4  ;;  %v122_v18 = vadd.f32 %v121_v14, %v120_v6  ;;  %v116_v19 = vsel %vm109_vm0, %v94_v9, 0.0  ;;  %v126_v20 = vsel %vm109_vm0, %v96_v11, 0.0  ;;  %v218_v46 = vld [vmem:[#allocation6 + $0x18] sm:$0xff] }
  0x35   :  { %v117_v24 = vadd.f32 %v116_v19, %v115_v10  ;;  %v127_v25 = vadd.f32 %v126_v20, %v125_v15  ;;  %v130_v26 = vsel %vm109_vm0, %v81_v8, 0.0  ;;  %v131_v27 = vsel %vm109_vm0, %v97_v16, 0.0 }
  0x36   :  { %113 = vadd.xlane.f32.xlu0 %v112_v17  ;;  %123 = vadd.xlane.f32.xlu1 %v122_v18  ;;  %v135_v28 = vsel %vm109_vm0, %v82_v12, 0.0  ;;  %v136_v29 = vsel %vm109_vm0, %v98_v23, 0.0  ;;  %v99_v30 = vcombine.high %v83_v21, %v83_v21  ;;  %v100_v31 = vcombine.high %v84_v22, %v84_v22  ;;  %v219_v18 = vld [vmem:[#allocation8] sm:$0xff] }
  0x37   :  { %v132_v32 = vadd.f32 %v131_v27, %v130_v26  ;;  %v137_v33 = vadd.f32 %v136_v29, %v135_v28  ;;  %v140_v34 = vsel %vm109_vm0, %v83_v21, 0.0  ;;  %v145_v36 = vsel %vm109_vm0, %v84_v22, 0.0 }
  0x38   :  { %v141_v35 = vsel %vm109_vm0, %v99_v30, 0.0  ;;  %v146_v37 = vsel %vm109_vm0, %v100_v31, 0.0  ;;  %v785_v40 = vmov 0.0   ;;  %v265_v43 = vcombine.high %v215_v41, %v215_v41 }
  0x39   :  { %v142_v38 = vadd.f32 %v141_v35, %v140_v34  ;;  %v147_v39 = vadd.f32 %v146_v37, %v145_v36  ;;  %75 = vst.msk [vmem:[#allocation2] sm:$0xff] %vm74_vm1, %v785_v40  ;;  %352 = vmatprep.mubr.f32.mxu0 %v785_v40  ;;  %423 = vmatprep.mubr.f32.mxu1 %v785_v40  ;;  %v159_v50 = vand.u32 127, %v158_v49  ;;  %v851_v51 = vshrl.u32 %v158_v49, 7 }
  0x3a   :  { %118 = vadd.xlane.f32.xlu0 %v117_v24  ;;  %128 = vadd.xlane.f32.xlu1 %v127_v25  ;;  %v266_v44 = vcombine.high %v216_v42, %v216_v42  ;;  %v267_v47 = vcombine.high %v217_v45, %v217_v45  ;;  %v268_v48 = vcombine.high %v218_v46, %v218_v46  ;;  %vm192_vm2 = vcmask 1041409   ;;  %v580_v24 = vld [vmem:[#allocation9] sm:$0xff] }
  0x3b   :  { %657 = vmatprep.subr.msk.mxu0 %vm109_vm0, %v265_v43  ;;  %v162_v54 = vsub.s32 %v159_v50, %v851_v51  ;;  %vm194_vm3 = vcmask 1042434   ;;  %vm196_vm4 = vcmask 1043459   ;;  %vm198_vm5 = vcmask 1044484  }
  0x3c   :  { %660 = vmatprep.subr.msk.mxu1 %vm109_vm0, %v266_v44  ;;  %658 = vmatpush1.msk.msra.mxu0 %vm109_vm0, %v215_v41  ;;  %vm200_vm6 = vcmask 1045509   ;;  %vm202_vm7 = vcmask 1046534   ;;  %vm204_vm8 = vcmask 1047559   ;;  %v223_v16 = vsub.s32 0, %v851_v51 }
  0x3d   :  { %661 = vmatpush1.msk.msra.mxu1 %vm109_vm0, %v216_v42  ;;  %663 = vmatprep.subr.msk.mxu0 %vm109_vm0, %v267_v47  ;;  %v231_v17 = vsub.s32 2, %v851_v51  ;;  %v227_v19 = vsub.s32 1, %v851_v51  ;;  %v235_v20 = vsub.s32 3, %v851_v51  ;;  %v239_v23 = vsub.s32 4, %v851_v51 }
  0x3e   :  { %133 = vadd.xlane.f32.xlu0 %v132_v32  ;;  %138 = vadd.xlane.f32.xlu1 %v137_v33  ;;  %v224_v21 = vrot.slane %v219_v18, %v223_v16  ;;  %v243_v27 = vsub.s32 5, %v851_v51  ;;  %v247_v32 = vsub.s32 6, %v851_v51  ;;  %v585_v33 = vrot.slane %v580_v24, %v223_v16 }
  0x3f   :  { %666 = vmatprep.subr.msk.mxu1 %vm109_vm0, %v268_v48  ;;  %v232_v22 = vrot.slane %v219_v18, %v231_v17  ;;  %v228_v25 = vrot.slane %v219_v18, %v227_v19  ;;  %v236_v26 = vrot.slane %v219_v18, %v235_v20  ;;  %v589_v35 = vrot.slane %v580_v24, %v227_v19 }
  0x40   :  { %v76_v10 = vld [vmem:[#allocation2] sm:$0xff]  ;;  %v240_v37 = vrot.slane %v219_v18, %v239_v23  ;;  %v244_v42 = vrot.slane %v219_v18, %v243_v27  ;;  %v248_v48 = vrot.slane %v219_v18, %v247_v32  ;;  %v597_v49 = vrot.slane %v580_v24, %v235_v20 }
  0x41   :  { %vm648_vm9 = vcmask 7168  }
  0x42   :  { %143 = vadd.xlane.f32.xlu0 %v142_v38  ;;  %148 = vadd.xlane.f32.xlu1 %v147_v39  ;;  %v251_v38 = vsub.s32 7, %v851_v51 }
  0xbf   :  { %v114_v52 = vpop.xlane.xlu0 %113  ;;  %v124_v53 = vpop.xlane.xlu1 %123 }
  0xc0   :  { %v163_v57 = vrot.slane %v114_v52, %v162_v54  ;;  %v171_v60 = vrot.slane %v124_v53, %v162_v54  ;;  %v252_v53 = vrot.slane %v219_v18, %v251_v38 }
  0xc3   :  { %v119_v55 = vpop.xlane.xlu0 %118  ;;  %v129_v56 = vpop.xlane.xlu1 %128 }
  0xc4   :  { %v167_v58 = vrot.slane %v119_v55, %v162_v54  ;;  %v175_v59 = vrot.slane %v129_v56, %v162_v54 }
  0xc6   :  { %v193_v61 = vsel %vm192_vm2, %v167_v58, %v163_v57  ;;  %v601_v58 = vrot.slane %v580_v24, %v239_v23 }
  0xc7   :  { %v195_v62 = vsel %vm194_vm3, %v171_v60, %v193_v61  ;;  %v134_v63 = vpop.xlane.xlu0 %133  ;;  %v139_v0 = vpop.xlane.xlu1 %138 }
  0xc8   :  { %v197_v1 = vsel %vm196_vm4, %v175_v59, %v195_v62  ;;  %v179_v2 = vrot.slane %v134_v63, %v162_v54  ;;  %v183_v3 = vrot.slane %v139_v0, %v162_v54  ;;  %v605_v63 = vrot.slane %v580_v24, %v243_v27 }
  0xca   :  { %v199_v4 = vsel %vm198_vm5, %v179_v2, %v197_v1 }
  0xcb   :  { %v144_v5 = vpop.xlane.xlu0 %143  ;;  %v149_v6 = vpop.xlane.xlu1 %148  ;;  %v201_v9 = vsel %vm200_vm6, %v183_v3, %v199_v4 }
  0xcc   :  { %v187_v7 = vrot.slane %v144_v5, %v162_v54  ;;  %v191_v8 = vrot.slane %v149_v6, %v162_v54 }
  0xce   :  { %v203_v11 = vsel %vm202_vm7, %v187_v7, %v201_v9  ;;  %v609_v7 = vrot.slane %v580_v24, %v247_v32 }
  0xcf   :  { %v205_v12 = vsel %vm204_vm8, %v191_v8, %v203_v11  ;;  %v613_v11 = vrot.slane %v580_v24, %v251_v38 }
  0xd0   :  { %v207_v13 = vadd.f32 %v205_v12, %v76_v10 }
  0xd2   :  { %209 = vst.msk [vmem:[#allocation2] sm:$0xff] %vm74_vm1, %v207_v13 }
  0xd9   :  { %v213_v14 = vld [vmem:[#allocation2] sm:$0xff] }
  0xda   :  { %v214_v15 = vmul.f32 0.00390625, %v213_v14 }
  0xdc   :  { %659 = vmatmul.mubr.msk.f32.vlgmr.msra.gmra.mxu0 %vm74_vm1, %v214_v15  ;;  %662 = vmatmul.mubr.msk.f32.vlgmr.msra.gmra.mxu1 %vm74_vm1, %v214_v15 }
  0xdd   :  { %664 = vmatpush1.msk.msra.mxu0 %vm109_vm0, %v217_v45  ;;  %494 = vmatprep.mubr.f32.mxu0 %v785_v40 }
  0xde   :  { %667 = vmatpush1.msk.msra.mxu1 %vm109_vm0, %v218_v46  ;;  %565 = vmatprep.mubr.f32.mxu1 %v785_v40  ;;  %v593_v46 = vrot.slane %v580_v24, %v231_v17  ;;  %v640_v17 = vstv %s879_s4 }
  0xe0   :  { %665 = vmatmul.mubr.msk.f32.vlgmr.msra.gmra.mxu0 %vm74_vm1, %v214_v15  ;;  %668 = vmatmul.mubr.msk.f32.vlgmr.msra.gmra.mxu1 %vm74_vm1, %v214_v15 }
 0x19c   :  { %v354_v28 = vpop.f32.mrf.mxu0  ;;  %v425_v29 = vpop.f32.mrf.mxu1 }
 0x19d   :  { %v355_v30 = vadd.f32 %v354_v28, %v224_v21  ;;  %v426_v31 = vadd.f32 %v425_v29, %v232_v22 }
 0x19e   :  { %v356_v34 = vpop.f32.mrf.mxu0  ;;  %v427_v36 = vpop.f32.mrf.mxu1 }
 0x19f   :  { %v572_v39 = vmax.f32 %v355_v30, 0.0  ;;  %v357_v40 = vadd.f32 %v356_v34, %v228_v25  ;;  %v428_v41 = vadd.f32 %v427_v36, %v236_v26  ;;  %v574_v45 = vmax.f32 %v426_v31, 0.0 }
 0x1a0   :  { %v496_v43 = vpop.f32.mrf.mxu0  ;;  %v567_v44 = vpop.f32.mrf.mxu1 }
 0x1a1   :  { %v573_v47 = vmax.f32 %v357_v40, 0.0  ;;  %v497_v50 = vadd.f32 %v496_v43, %v240_v37  ;;  %v622_v54 = vmul.f32 %v585_v33, %v572_v39  ;;  %v575_v56 = vmax.f32 %v428_v41, 0.0 }
 0x1a2   :  { %v498_v52 = vpop.f32.mrf.mxu0  ;;  %v569_v51 = vpop.f32.mrf.mxu1  ;;  %v624_v59 = vmul.f32 %v593_v46, %v574_v45  ;;  %v568_v62 = vadd.f32 %v567_v44, %v248_v48 }
 0x1a3   :  { %v623_v55 = vmul.f32 %v589_v35, %v573_v47  ;;  %v499_v57 = vadd.f32 %v498_v52, %v244_v42  ;;  %v576_v61 = vmax.f32 %v497_v50, 0.0  ;;  %v625_v0 = vmul.f32 %v597_v49, %v575_v56 }
 0x1a4   :  { %v570_v3 = vadd.f32 %v569_v51, %v252_v53  ;;  %v578_v6 = vmax.f32 %v568_v62, 0.0 }
 0x1a5   :  { %v630_v60 = vadd.f32 %v623_v55, %v622_v54  ;;  %v577_v2 = vmax.f32 %v499_v57, 0.0  ;;  %v626_v5 = vmul.f32 %v601_v58, %v576_v61 }
 0x1a6   :  { %v579_v10 = vmax.f32 %v570_v3, 0.0  ;;  %v628_v12 = vmul.f32 %v609_v7, %v578_v6 }
 0x1a7   :  { %v631_v1 = vadd.f32 %v630_v60, %v624_v59  ;;  %v627_v9 = vmul.f32 %v605_v63, %v577_v2 }
 0x1a8   :  { %v629_v14 = vmul.f32 %v613_v11, %v579_v10 }
 0x1a9   :  { %v632_v4 = vadd.f32 %v631_v1, %v625_v0 }
 0x1ab   :  { %v633_v8 = vadd.f32 %v632_v4, %v626_v5 }
 0x1ad   :  { %v634_v13 = vadd.f32 %v633_v8, %v627_v9 }
 0x1af   :  { %v635_v15 = vadd.f32 %v634_v13, %v628_v12 }
 0x1b1   :  { %v636_v16 = vadd.f32 %v635_v15, %v629_v14 }
 0x1b3   :  { %637 = vadd.xlane.f32.xlu0 %v636_v16 }
 0x23c   :  { %v638_v18 = vpop.xlane.xlu0 %637 }
 0x23d   :  { %v641_v19 = vadd.f32 %v640_v17, %v638_v18 }
 0x23f   :  { %v669_v20 = vmul.f32 -1.442695, %v641_v19 }
 0x241   :  { %689 = vpow2.f32 %v669_v20 }
 0x24e   :  { %v690_v21 = vpop.eup %689 }
 0x24f   :  { %v645_v22 = vadd.f32 1.0, %v690_v21 }
 0x251   :  { %691 = vrcp.f32 %v645_v22 }
 0x25e   :  { %v692_v23 = vpop.eup %691 }
 0x25f   :  { %649 = vst.msk [vmem:[%s880_s5] sm:$0xff] %vm648_vm9, %v692_v23 }
 0x260   :  { %654 = vsyncpa [#allocation5], 1 }
 0x261   :  { %655 = vsyncpa [#allocation7], 1 }
 0x262   :  { %656 = vsyncpa [#allocation10], 1 }

</bundles_post_ra>
